<compile_context>
chip_gen: v7x
topology: tpu7x:2x2x1
jax: 0.10.0
libtpu: 0.0.40
codegen_flags: <defaults>
</compile_context>

<pallas_src>
import functools

import jax
import jax.numpy as jnp
from jax.experimental import pallas as pl
from jax.experimental.pallas import tpu as pltpu

EPS = 1e-8
_CHUNK = 512        # lanes processed per inner-loop iteration (multiple of 128)
_NUM_CORES = 2      # leading "parallel" grid axis (uses both TCs on v7x)


def _fmeasure_kernel(y_ref, lab_ref, num_ref, nk_ref, sq_ref, *, chunk):
    """Accumulate per-class partial sums for one (C, tile_n) logits tile.

    y_ref:   (C, tile_n)  logits (f32/bf16), class-major -> N is lane-dense
    lab_ref: (1, tile_n)  int32 labels, -1 on padded columns
    num_ref/nk_ref/sq_ref: (1, C, chunk) f32 per-core partial accumulators,
        resident across the "arbitrary" N axis of the grid.
    """
    step = pl.program_id(1)

    @pl.when(step == 0)
    def _init():
        num_ref[...] = jnp.zeros_like(num_ref)
        nk_ref[...] = jnp.zeros_like(nk_ref)
        sq_ref[...] = jnp.zeros_like(sq_ref)

    C = y_ref.shape[0]
    n_chunks = y_ref.shape[1] // chunk
    cls = jax.lax.broadcasted_iota(jnp.int32, (C, chunk), 0)   # hoisted constant

    @pl.loop(0, n_chunks)
    def _chunk_body(j):
        off = pl.multiple_of(j * chunk, chunk)
        y = y_ref[:, pl.ds(off, chunk)].astype(jnp.float32)    # (C, chunk)
        lab = lab_ref[:, pl.ds(off, chunk)]                    # (1, chunk)
        # qp = softmax(y) / max_c softmax(y) == exp(y - max_c y)
        m = jnp.max(y, axis=0, keepdims=True)                  # (1, chunk)
        qp = jnp.exp(y - m)                                    # (C, chunk)
        onehot = (cls == lab).astype(jnp.float32)              # (C, chunk)
        # Lane-dense VPU accumulation; lane reduction happens in the epilogue.
        num_ref[0] += onehot * qp
        nk_ref[0] += onehot
        sq_ref[0] += qp


def fmeasure_loss(y, lab, num_classes=4, beta=1, tile_n=65536):
    """Pallas TPU implementation of FmeasureLoss.forward.

    y:   (N, num_classes) float logits (f32 or bf16; cast to f32 in-kernel)
    lab: (N,) integer class indices
    """
    assert tile_n % _CHUNK == 0
    N, C = y.shape
    assert C == num_classes
    beta2 = float(beta) ** 2
    lab = lab.reshape(-1).astype(jnp.int32)

    def _round_up(a, b):
        return ((a + b - 1) // b) * b

    # Split N across the parallel (core) axis, then into tile_n-wide steps.
    per_core = _round_up(max(1, -(-N // _NUM_CORES)), _CHUNK)
    if per_core <= tile_n:
        tn, steps = per_core, 1
    else:
        tn = tile_n
        steps = -(-per_core // tn)
    per_core = steps * tn
    n_pad = _NUM_CORES * per_core
    pad_cols = n_pad - N

    # Class-major, lane-dense layout.  Padded logits MUST be exactly zero:
    # each padded column then contributes exactly 1.0 per class to sum(qp),
    # which is subtracted as a constant below.  Padded labels are -1 so they
    # never match the one-hot (num / Nk are unaffected).
    # TODO(synk): this pad+transpose is an extra HBM copy of the logits; have
    # the producer emit (num_classes, N) logits (or jit the caller so XLA
    # fuses it) to remove roughly half of the end-to-end HBM traffic.
    y_t = jnp.pad(y.T, ((0, 0), (0, pad_cols)))
    lab_t = jnp.pad(lab[None, :], ((0, 0), (0, pad_cols)), constant_values=-1)

    kernel = functools.partial(_fmeasure_kernel, chunk=_CHUNK)
    partial_shape = jax.ShapeDtypeStruct((_NUM_CORES, C, _CHUNK), jnp.float32)
    out_spec = pl.BlockSpec((1, C, _CHUNK), lambda c, i: (c, 0, 0))

    p_num, p_nk, p_sq = pl.pallas_call(
        kernel,
        out_shape=(partial_shape, partial_shape, partial_shape),
        grid_spec=pltpu.PrefetchScalarGridSpec(
            num_scalar_prefetch=0,
            grid=(_NUM_CORES, steps),
            in_specs=[
                pl.BlockSpec((C, tn), lambda c, i: (0, c * steps + i)),
                pl.BlockSpec((1, tn), lambda c, i: (0, c * steps + i)),
            ],
            out_specs=[out_spec, out_spec, out_spec],
        ),
        compiler_params=pltpu.CompilerParams(
            dimension_semantics=("parallel", "arbitrary"),
        ),
    )(y_t, lab_t)

    # Tiny epilogue in plain JAX: fold cores + lanes, correct for padding.
    num = jnp.sum(p_num, axis=(0, 2))                       # (C,)
    nk = jnp.sum(p_nk, axis=(0, 2))                         # (C,)
    sq = jnp.sum(p_sq, axis=(0, 2)) - float(pad_cols)       # (C,)
    den = beta2 * nk + sq + EPS
    return -jnp.mean((1.0 + beta2) * num / den)


def _fmeasure_loss_ref(y, lab, num_classes=4, beta=1):
    """Plain-JAX reference mirroring the PyTorch code, for correctness check."""
    beta2 = float(beta) ** 2
    y = y.astype(jnp.float32)
    q = jax.nn.softmax(y, axis=1)
    qp = q / jnp.max(q, axis=1, keepdims=True)
    onehot = jax.nn.one_hot(lab.reshape(-1), num_classes, dtype=jnp.float32)
    Nk = jnp.sum(onehot, axis=0, keepdims=True)                      # (1, C)
    tp = jnp.sum(onehot * qp, axis=1, keepdims=True)                 # (N, 1)
    num = jnp.matmul(onehot.T, tp) * (1.0 + beta2)                   # (C, 1)
    den = (beta2 * Nk + jnp.sum(qp, axis=0, keepdims=True) + EPS).T  # (C, 1)
    return -jnp.mean(num / den)


if __name__ == "__main__":
    num_classes = 4
    key = jax.random.PRNGKey(0)
    k1, k2, k3, k4 = jax.random.split(key, 4)

    # Small case (single step per core; exercises the padding-correction path).
    y_small = jax.random.normal(k1, (8, num_classes), dtype=jnp.float32)
    lab_small = jax.random.randint(k2, (8,), 0, num_classes, dtype=jnp.int32)
    loss_small = jax.block_until_ready(
        fmeasure_loss(y_small, lab_small, num_classes=num_classes, beta=1)
    )
    ref_small = _fmeasure_loss_ref(y_small, lab_small, num_classes=num_classes, beta=1)
    assert jnp.allclose(loss_small, ref_small, atol=1e-4, rtol=1e-4), (loss_small, ref_small)

    # Multi-step / multi-chunk case: tile_n=1024 -> 2 grid steps per core,
    # 2 chunks per step, with padded columns corrected in the epilogue.
    y_big = jax.random.normal(k3, (3000, num_classes), dtype=jnp.float32)
    lab_big = jax.random.randint(k4, (3000,), 0, num_classes, dtype=jnp.int32)
    loss_big = jax.block_until_ready(
        fmeasure_loss(y_big, lab_big, num_classes=num_classes, beta=1, tile_n=1024)
    )
    ref_big = _fmeasure_loss_ref(y_big, lab_big, num_classes=num_classes, beta=1)
    assert jnp.allclose(loss_big, ref_big, atol=1e-4, rtol=1e-4), (loss_big, ref_big)

    print("KERNEL_OK")
</pallas_src>

<mosaic_0001>
module attributes {stable_mosaic.version = 11 : i64} {
  func.func @_fmeasure_kernel(%arg0: i32, %arg1: i32, %arg2: memref<4x512xf32, #tpu.memory_space<vmem>>, %arg3: memref<1x512xi32, #tpu.memory_space<vmem>>, %arg4: memref<1x4x512xf32, #tpu.memory_space<vmem>>, %arg5: memref<1x4x512xf32, #tpu.memory_space<vmem>>, %arg6: memref<1x4x512xf32, #tpu.memory_space<vmem>>) attributes {dimension_semantics = [#tpu.dimension_semantics<parallel>, #tpu.dimension_semantics<arbitrary>], iteration_bounds = array<i64: 2, 1>, scalar_prefetch = 0 : i64, scratch_operands = 0 : i64, tpu.core_type = #tpu.core_type<tc>, window_params = [{transform_indices = @transform_0, window_bounds = array<i64: 4, 512>}, {transform_indices = @transform_1, window_bounds = array<i64: 1, 512>}, {transform_indices = @transform_2, window_bounds = array<i64: 1, 4, 512>}, {transform_indices = @transform_3, window_bounds = array<i64: 1, 4, 512>}, {transform_indices = @transform_4, window_bounds = array<i64: 1, 4, 512>}]} {
    %c0_i32 = arith.constant 0 : i32
    %0 = arith.cmpi eq, %arg1, %c0_i32 : i32
    %1 = arith.extui %0 : i1 to i32
    %c0_i32_0 = arith.constant 0 : i32
    %2 = arith.cmpi ne, %1, %c0_i32_0 : i32
    scf.if %2 {
      %cst_23 = arith.constant 0.000000e+00 : f32
      %40 = vector.broadcast %cst_23 : f32 to vector<1x4x512xf32>
      %c0_24 = arith.constant 0 : index
      %c0_25 = arith.constant 0 : index
      %c0_26 = arith.constant 0 : index
      %41 = vector.load %arg4[%c0_24, %c0_25, %c0_26] : memref<1x4x512xf32, #tpu.memory_space<vmem>>, vector<1x4x512xf32>
      tpu.vector_store %arg4[%c0_24, %c0_25, %c0_26], %40 {strides = array<i32>} : memref<1x4x512xf32, #tpu.memory_space<vmem>>, vector<1x4x512xf32>,
      %cst_27 = arith.constant 0.000000e+00 : f32
      %42 = vector.broadcast %cst_27 : f32 to vector<1x4x512xf32>
      %c0_28 = arith.constant 0 : index
      %c0_29 = arith.constant 0 : index
      %c0_30 = arith.constant 0 : index
      %43 = vector.load %arg5[%c0_28, %c0_29, %c0_30] : memref<1x4x512xf32, #tpu.memory_space<vmem>>, vector<1x4x512xf32>
      tpu.vector_store %arg5[%c0_28, %c0_29, %c0_30], %42 {strides = array<i32>} : memref<1x4x512xf32, #tpu.memory_space<vmem>>, vector<1x4x512xf32>,
      %cst_31 = arith.constant 0.000000e+00 : f32
      %44 = vector.broadcast %cst_31 : f32 to vector<1x4x512xf32>
      %c0_32 = arith.constant 0 : index
      %c0_33 = arith.constant 0 : index
      %c0_34 = arith.constant 0 : index
      %45 = vector.load %arg6[%c0_32, %c0_33, %c0_34] : memref<1x4x512xf32, #tpu.memory_space<vmem>>, vector<1x4x512xf32>
      tpu.vector_store %arg6[%c0_32, %c0_33, %c0_34], %44 {strides = array<i32>} : memref<1x4x512xf32, #tpu.memory_space<vmem>>, vector<1x4x512xf32>,
    } else {
    }
    %3 = tpu.iota {dimensions = array<i32: 0>} : vector<4x512xi32>
    %c0_i32_1 = arith.constant 0 : i32
    %c1_i32 = arith.constant 1 : i32
    %4 = arith.muli %c0_i32_1, %c1_i32 : i32
    %c0_i32_2 = arith.constant 0 : i32
    %5 = arith.addi %c0_i32_2, %4 : i32
    %c512_i32 = arith.constant 512 : i32
    %6 = arith.muli %5, %c512_i32 : i32
    %7 = tpu.assume_multiple %6, 512 : i32
    %c0 = arith.constant 0 : index
    %8 = arith.index_cast %7 : i32 to index
    %9 = vector.load %arg2[%c0, %8] : memref<4x512xf32, #tpu.memory_space<vmem>>, vector<4x512xf32>
    %c0_3 = arith.constant 0 : index
    %10 = arith.index_cast %7 : i32 to index
    %11 = vector.load %arg3[%c0_3, %10] : memref<1x512xi32, #tpu.memory_space<vmem>>, vector<1x512xi32>
    %cst = arith.constant dense<0xFF800000> : vector<512xf32>
    %12 = vector.multi_reduction <maximumf>, %9, %cst [0] : vector<4x512xf32> to vector<512xf32>
    %13 = vector.shape_cast %12 : vector<512xf32> to vector<1x512xf32>
    %14 = vector.broadcast %13 : vector<1x512xf32> to vector<4x512xf32>
    %15 = arith.subf %9, %14 : vector<4x512xf32>
    %16 = math.exp %15 : vector<4x512xf32>
    %17 = vector.broadcast %11 : vector<1x512xi32> to vector<4x512xi32>
    %18 = arith.cmpi eq, %3, %17 : vector<4x512xi32>
    %19 = arith.extui %18 : vector<4x512xi1> to vector<4x512xi32>
    %20 = arith.sitofp %19 : vector<4x512xi32> to vector<4x512xf32>
    %c0_4 = arith.constant 0 : index
    %c0_5 = arith.constant 0 : index
    %c0_6 = arith.constant 0 : index
    %21 = vector.load %arg4[%c0_4, %c0_5, %c0_6] : memref<1x4x512xf32, #tpu.memory_space<vmem>>, vector<1x4x512xf32>
    %22 = vector.shape_cast %21 : vector<1x4x512xf32> to vector<4x512xf32>
    %23 = arith.mulf %20, %16 : vector<4x512xf32>
    %24 = arith.addf %22, %23 : vector<4x512xf32>
    %c0_7 = arith.constant 0 : index
    %c0_8 = arith.constant 0 : index
    %c0_9 = arith.constant 0 : index
    %25 = vector.load %arg4[%c0_7, %c0_8, %c0_9] : memref<1x4x512xf32, #tpu.memory_space<vmem>>, vector<1x4x512xf32>
    %26 = vector.shape_cast %25 : vector<1x4x512xf32> to vector<4x512xf32>
    %27 = vector.shape_cast %24 : vector<4x512xf32> to vector<1x4x512xf32>
    tpu.vector_store %arg4[%c0_7, %c0_8, %c0_9], %27 {strides = array<i32>} : memref<1x4x512xf32, #tpu.memory_space<vmem>>, vector<1x4x512xf32>,
    %c0_10 = arith.constant 0 : index
    %c0_11 = arith.constant 0 : index
    %c0_12 = arith.constant 0 : index
    %28 = vector.load %arg5[%c0_10, %c0_11, %c0_12] : memref<1x4x512xf32, #tpu.memory_space<vmem>>, vector<1x4x512xf32>
    %29 = vector.shape_cast %28 : vector<1x4x512xf32> to vector<4x512xf32>
    %30 = arith.addf %29, %20 : vector<4x512xf32>
    %c0_13 = arith.constant 0 : index
    %c0_14 = arith.constant 0 : index
    %c0_15 = arith.constant 0 : index
    %31 = vector.load %arg5[%c0_13, %c0_14, %c0_15] : memref<1x4x512xf32, #tpu.memory_space<vmem>>, vector<1x4x512xf32>
    %32 = vector.shape_cast %31 : vector<1x4x512xf32> to vector<4x512xf32>
    %33 = vector.shape_cast %30 : vector<4x512xf32> to vector<1x4x512xf32>
    tpu.vector_store %arg5[%c0_13, %c0_14, %c0_15], %33 {strides = array<i32>} : memref<1x4x512xf32, #tpu.memory_space<vmem>>, vector<1x4x512xf32>,
    %c0_16 = arith.constant 0 : index
    %c0_17 = arith.constant 0 : index
    %c0_18 = arith.constant 0 : index
    %34 = vector.load %arg6[%c0_16, %c0_17, %c0_18] : memref<1x4x512xf32, #tpu.memory_space<vmem>>, vector<1x4x512xf32>
    %35 = vector.shape_cast %34 : vector<1x4x512xf32> to vector<4x512xf32>
    %36 = arith.addf %35, %16 : vector<4x512xf32>
    %c0_19 = arith.constant 0 : index
    %c0_20 = arith.constant 0 : index
    %c0_21 = arith.constant 0 : index
    %37 = vector.load %arg6[%c0_19, %c0_20, %c0_21] : memref<1x4x512xf32, #tpu.memory_space<vmem>>, vector<1x4x512xf32>
    %38 = vector.shape_cast %37 : vector<1x4x512xf32> to vector<4x512xf32>
    %39 = vector.shape_cast %36 : vector<4x512xf32> to vector<1x4x512xf32>
    tpu.vector_store %arg6[%c0_19, %c0_20, %c0_21], %39 {strides = array<i32>} : memref<1x4x512xf32, #tpu.memory_space<vmem>>, vector<1x4x512xf32>,
    %c1_i32_22 = arith.constant 1 : i32
    return
  }
  func.func @transform_0(%arg0: i32, %arg1: i32) -> (i32, i32) {
    %c1_i32 = arith.constant 1 : i32
    %0 = arith.muli %arg0, %c1_i32 : i32
    %1 = arith.addi %0, %arg1 : i32
    %c0_i32 = arith.constant 0 : i32
    %c0_i32_0 = arith.constant 0 : i32
    return %c0_i32, %1 : i32, i32
  }
  func.func @transform_1(%arg0: i32, %arg1: i32) -> (i32, i32) {
    %c1_i32 = arith.constant 1 : i32
    %0 = arith.muli %arg0, %c1_i32 : i32
    %1 = arith.addi %0, %arg1 : i32
    %c0_i32 = arith.constant 0 : i32
    %c0_i32_0 = arith.constant 0 : i32
    return %c0_i32, %1 : i32, i32
  }
  func.func @transform_2(%arg0: i32, %arg1: i32) -> (i32, i32, i32) {
    %c0_i32 = arith.constant 0 : i32
    %c0_i32_0 = arith.constant 0 : i32
    %c0_i32_1 = arith.constant 0 : i32
    return %arg0, %c0_i32, %c0_i32_0 : i32, i32, i32
  }
  func.func @transform_3(%arg0: i32, %arg1: i32) -> (i32, i32, i32) {
    %c0_i32 = arith.constant 0 : i32
    %c0_i32_0 = arith.constant 0 : i32
    %c0_i32_1 = arith.constant 0 : i32
    return %arg0, %c0_i32, %c0_i32_0 : i32, i32, i32
  }
  func.func @transform_4(%arg0: i32, %arg1: i32) -> (i32, i32, i32) {
    %c0_i32 = arith.constant 0 : i32
    %c0_i32_0 = arith.constant 0 : i32
    %c0_i32_1 = arith.constant 0 : i32
    return %arg0, %c0_i32, %c0_i32_0 : i32, i32, i32
  }
}

</mosaic_0001>

<bundles_post_ra>
// kernel: tpu_custom_call.1
= control target key start
LH: loop header
LB: loop body
LE: loop exit
PB: predicated region body
PF: predicated region fallthrough
CT: control target
= control target key end

     0   :  { %10 = vsyncpa [#allocation3], 0  ;;  %s1338_s0 = inlined_call_operand.hbm [shape: f32[4,1024], index: 0, kind: input, shape index: {}]   ;;  %s1339_s1 = inlined_call_operand.hbm [shape: s32[1,1024], index: 1, kind: input, shape index: {}]   ;;  %s1340_s2 = inlined_call_operand.hbm [shape: f32[2,4,512], index: 2, kind: output, shape index: {0}]   ;;  %s1341_s3 = inlined_call_operand.hbm [shape: f32[2,4,512], index: 3, kind: output, shape index: {1}]   ;;  %s1342_s4 = inlined_call_operand.hbm [shape: f32[2,4,512], index: 4, kind: output, shape index: {2}]  }
   0x1   :  { %12 = vsyncpa [#allocation3 + $0x1], 0 }
   0x2   :  { %13 = vsyncpa [#allocation6], 0 }
   0x3   :  { %15 = vsyncpa [#allocation6 + $0x1], 0 }
   0x4   :  { %16 = vsyncpa [#allocation4], 0 }
   0x5   :  { %18 = vsyncpa [#allocation4 + $0x1], 0 }
   0x6   :  { %19 = vsyncpa [#allocation9], 0 }
   0x7   :  { %21 = vsyncpa [#allocation9 + $0x1], 0  ;;  %s1004_s15 = smov 0   ;;  %s1006_s16 = smov 0  }
   0x8   :  { %s1008_s17 = smov 0   ;;  %s1010_s18 = smov 0  }
   0x9   :  { %s1012_s19 = smov 0   ;;  %s1014_s20 = smov 0  }
   0xa LB: > { %s1035_s21 = sadd.s32 4294967295, %s971_s20   ;;  %s1344_s22 = sadd.s32 4294967294, %s971_s20   ;;  %s971_s20 = sphi %s1014_s20, %s27_s20   ;;  %s967_s19 = sphi %s1012_s19, %s1364_s19   ;;  %s963_s18 = sphi %s1010_s18, %s1363_s18   ;;  %s959_s17 = sphi %s1008_s17, %s1362_s17   ;;  %s955_s16 = sphi %s1006_s16, %s1361_s16   ;;  %s951_s15 = sphi %s1004_s15, %s1360_s15  }
   0xb   : > { %s39_s23 = sadd.s32 1, %s967_s19  ;;  %s48_s24 = sadd.s32 1, %s959_s17 }
   0xc   : > { %p41_p0 = scmp.ge.s32.totalorder %s39_s23, 2  ;;  %p55_p1 = scmp.ne.s32.totalorder %s959_s17, %s955_s16 }
   0xd   : > { %p56_p2 = scmp.eq.s32.totalorder %s971_s20, 0  ;;  %p61_p3 = scmp.ne.s32.totalorder %s955_s16, %s951_s15 }
   0xe   : > { %s1366_s23 = smov (%p41_p0, %s39_s23), 0  ;;  %p62_p5 = scmp.eq.s32.totalorder %s1035_s21, 0 }
   0xf   : > { %p1047_p4 = por %p56_p2, %p55_p1  ;;  %s45_s26 = ssub.s32 %s967_s19, %s1366_s23 }
  0x10   : > { %p113_p6 = scmp.eq.s32.totalorder %s1035_s21, 1  ;;  %p46_p7 = scmp.eq.s32.totalorder %s45_s26, 0 }
  0x11   : > { %p1055_p8 = por %p62_p5, %p61_p3  ;;  %p119_p10 = scmp.eq.s32.totalorder %s1344_s22, 1 }
  0x12   : > { %p1059_p9 = por %p113_p6, %p55_p1  ;;  %p708_p13 = scmp.lt.s32.totalorder %s971_s20, 2 }
  0x13   : > { %s1347_s27 = scalar_select %p1055_p8, 1, 0 }
  0x14   : > { %s1348_s28 = scalar_select %p1059_p9, 1, 0 }
  0x15   : > { %s1066_s29 = scalar_select %p46_p7, %s959_s17, %s48_s24  }
  0x16   : > { %p1068_p11 = por %p119_p10, %p61_p3  ;;  %s1075_s5 = sand.u32 1, %s959_s17  }
  0x17   : > { %s649_s6 = sshll.u32 %s1075_s5, 4  ;;  %s676_s7 = sshll.u32 %s967_s19, 8 }
  0x18   : > { %s1349_s30 = scalar_select %p1068_p11, 1, 0 }
  0x19   : > { %s1082_s10 = scalar_lea.hbm %s1338_s0, %s676_s7  ;;  %s195_s11 = scalar_lea.vmem [#allocation2], %s649_s6 }
  0x1a   : > { %s204_s12 = sshll.u32 %s195_s11, 4  ;;  %p1088_p0 = pnand %p708_p13, %p1047_p4  ;;  %s1084_s12 = int_to_ptr.vmem [resolvable:$true] %s204_s12 }
  0x1b   : > { %s192_s14 = scalar_lea.sflag [#allocation3], %s1075_s5  ;;  %s765_s24 = scalar_lea.hbm %s1082_s10, 256 }
  0x1c   : > { %p766_p3 = scmp.ne.s32.totalorder %s1082_s10, %s765_s24  ;;  %p767_p5 = pneg %p1088_p0 }
  0x1d   : > { %s770_s25 = scalar_lea.hbm %s1338_s0, 512  ;;  %p771_p4 = scmp.lt.u32.totalorder %s1082_s10, %s1338_s0 }
  0x1e   : > { %p768_p6 = pnand %p767_p5, %p766_p3  ;;  %p772_p10 = scmp.lt.u32.totalorder %s770_s25, %s765_s24 }
  0x1f   : > { %p774_p12 = scmp.lt.u32.totalorder %s765_s24, %s1082_s10 }
  0x20   : > { %p769_p7 = pneg %p768_p6  ;;  %p773_p13 = por %p772_p10, %p771_p4 }
  0x22   : > { %p775_p1 = por %p774_p12, %p773_p13 }
  0x24   : > { %p776_p2 = pnand %p775_p1, %p769_p7 }
  0x26   : > { %779 = shalt.err (!%p776_p2)
}
  0x27   : > { %s780_s9 = scalar_lea.vmem %s1084_s12, 256  ;;  %s973_s11 = smov [#allocation2]  }
  0x28   : > { %p781_p3 = scmp.ne.s32.totalorder %s1084_s12, %s780_s9  ;;  %s785_s26 = sshll.u32 %s973_s11, 4  ;;  %s786_s26 = int_to_ptr.vmem [resolvable:$false] %s785_s26 }
  0x29   : > { %s787_s6 = scalar_lea.vmem %s786_s26, 512  ;;  %p788_p9 = scmp.lt.s32.totalorder %s1084_s12, %s786_s26 }
  0x2a   : > { %p783_p6 = pnand %p781_p3, %p767_p5  ;;  %p789_p4 = scmp.lt.s32.totalorder %s787_s6, %s780_s9 }
  0x2c   : > { %p784_p11 = pneg %p783_p6  ;;  %p790_p10 = por %p789_p4, %p788_p9 }
  0x2e   : > { %p791_p12 = pnand %p790_p10, %p784_p11 }
  0x30   : > { %794 = shalt.err (!%p791_p12)
}
  0x31   : > { %694 = dma.hbm_to_vmem [thread:$0]  (!%p1088_p0), %s1082_s10, 256, %s1084_s12, %s192_s14  }
  0x32   : > { %p1351_p1 = scmp.lt.s32.totalorder %s971_s20, 3  ;;  %p1352_p2 = scmp.ge.s32.totalorder %s971_s20, 1 }
  0x33   : > { %s652_s25 = sshll.u32 %s1075_s5, 2  ;;  %s677_s7 = sshll.u32 %s967_s19, 6 }
  0x34   : > { %p1124_p7 = pnand %p1352_p2, %p1351_p1  ;;  %s1133_s11 = scalar_lea.hbm %s1339_s1, %s677_s7 }
  0x35   : > { %s215_s26 = scalar_lea.vmem [#allocation5], %s652_s25  ;;  %s212_s10 = scalar_lea.sflag [#allocation6], %s1075_s5 }
  0x36   : > { %s1353_s24 = scalar_select %p1124_p7, 1, 0 }
  0x37   : > { %s224_s6 = sshll.u32 %s215_s26, 4  ;;  %s795_s12 = scalar_lea.hbm %s1133_s11, 64  ;;  %s225_s6 = int_to_ptr.vmem [resolvable:$true] %s224_s6 }
  0x38   : > { %p796_p9 = scmp.ne.s32.totalorder %s1133_s11, %s795_s12  ;;  %s800_s8 = scalar_lea.hbm %s1339_s1, 128 }
  0x39   : > { %p801_p3 = scmp.lt.u32.totalorder %s1133_s11, %s1339_s1  ;;  %p802_p6 = scmp.lt.u32.totalorder %s800_s8, %s795_s12 }
  0x3a   : > { %p798_p11 = pnand %p796_p9, %p767_p5  ;;  %p804_p10 = scmp.lt.u32.totalorder %s795_s12, %s1133_s11 }
  0x3b   : > { %p803_p4 = por %p802_p6, %p801_p3 }
  0x3c   : > { %p799_p13 = pneg %p798_p11 }
  0x3d   : > { %p805_p12 = por %p804_p10, %p803_p4 }
  0x3f   : > { %p806_p1 = pnand %p805_p12, %p799_p13 }
  0x41   : > { %809 = shalt.err (!%p806_p1)
}
  0x42   : > { %s810_s5 = scalar_lea.vmem %s225_s6, 64  ;;  %s974_s25 = smov [#allocation5]  }
  0x43   : > { %p811_p2 = scmp.ne.s32.totalorder %s225_s6, %s810_s5  ;;  %s815_s22 = sshll.u32 %s974_s25, 4  ;;  %s816_s22 = int_to_ptr.vmem [resolvable:$false] %s815_s22 }
  0x44   : > { %s817_s26 = scalar_lea.vmem %s816_s22, 128  ;;  %p818_p8 = scmp.lt.s32.totalorder %s225_s6, %s816_s22 }
  0x45   : > { %p813_p9 = pnand %p811_p2, %p767_p5  ;;  %p819_p7 = scmp.lt.s32.totalorder %s817_s26, %s810_s5 }
  0x47   : > { %p814_p11 = pneg %p813_p9  ;;  %p820_p3 = por %p819_p7, %p818_p8 }
  0x49   : > { %p821_p6 = pnand %p820_p3, %p814_p11 }
  0x4b   : > { %824 = shalt.err (!%p821_p6)
}
  0x4c   : > { %697 = dma.hbm_to_vmem [thread:$0]  (!%p1088_p0), %s1133_s11, 64, %s225_s6, %s212_s10  }
  0x4d   : > { %p1354_p13 = scmp.ne.s32.totalorder %s1353_s24, 0 }
  0x4e   : > { %s1158_s12 = sand.u32 (!%p1354_p13), 1, %s955_s16   ;;  %p1355_p8 = scmp.ne.s32.totalorder (!%p1354_p13), %s1347_s27, 0 }
  0x4f   : > { %233 = sbr.rel (%p1354_p13) target bundleno = 180 (0xb4), region = 28  ;;  %s1161_s14 = sshll.u32 (!%p1354_p13), %s1158_s12, 4 }
  0x50   : > { %s236_s8 = scalar_lea.sflag (!%p1354_p13), [#allocation3], %s1158_s12  ;;  %s239_s7 = scalar_lea.vmem (!%p1354_p13), [#allocation2], %s1161_s14 }
  0x56   : > { %934 = dma.done.wait (%p1355_p8), %s236_s8, 256  }
  0x57   : > { %936 = vsyncadd (%p1355_p8), %s236_s8, 4294967040  ;;  %s657_s13 = sshll.u32 %s1158_s12, 2  ;;  %s245_s24 = scalar_lea.sflag [#allocation6], %s1158_s12 }
  0x58   : > { %s248_s11 = scalar_lea.vmem [#allocation5], %s657_s13 }
  0x59   : > { %938 = dma.done.wait (%p1355_p8), %s245_s24, 64  }
  0x5a   : > { %940 = vsyncadd (%p1355_p8), %s245_s24, 4294967232  ;;  %v302_v0 = vlaneseq  ;;  %vm313_vm0 = vcmask 1043456   ;;  %v306_v6 = vld [vmem:[%s248_s11] sm:$0xf]  ;;  %v1177_v8 = vld [vmem:[%s239_s7 + $0x8] sm:$0xff]  ;;  %s433_s27 = sand.u32 1, %s1035_s21  }
  0x5b   : > { %v1175_v7 = vld [vmem:[%s239_s7] sm:$0xff]  ;;  %v310_v15 = vcombine.high %v1177_v8, %v1177_v8  ;;  %v328_v16 = vsel %vm313_vm0, %v1177_v8, -inf  ;;  %v975_v17 = vmov 0.0   ;;  %s1197_s6 = sshll.u32 %s963_s18, 8  ;;  %s280_s10 = scalar_lea.vmem [#allocation8], %s1161_s14 }
  0x5c   : > { %v303_v1 = vshrl.u32 %v302_v0, 7  ;;  %v309_v13 = vcombine.high %v1175_v7, %v1175_v7  ;;  %v314_v14 = vsel %vm313_vm0, %v1175_v7, -inf  ;;  %s467_s9 = sshll.u32 %s280_s10, 4  ;;  %v329_v27 = vrot.slane %v328_v16, 4  ;;  %s1210_s5 = scalar_lea.hbm %s1341_s3, %s1197_s6  ;;  %s1212_s9 = int_to_ptr.vmem [resolvable:$true] %s467_s9 }
  0x5d   : > { %v315_v24 = vrot.slane %v314_v14, 4  ;;  %v335_v28 = vsel %vm313_vm0, %v310_v15, -inf  ;;  %s1214_s25 = scalar_lea.sflag [#allocation9], %s433_s27  ;;  %s825_s22 = scalar_lea.vmem %s1212_s9, 256 }
  0x5e   : > { %v358_v2 = vsub.s32 0, %v303_v1  ;;  %v362_v3 = vsub.s32 1, %v303_v1  ;;  %v366_v4 = vsub.s32 2, %v303_v1  ;;  %v370_v5 = vsub.s32 3, %v303_v1  ;;  %p826_p0 = scmp.ne.s32.totalorder %s1212_s9, %s825_s22  ;;  %p1356_p5 = scmp.ne.s32.totalorder %s1348_s28, 0 }
  0x5f   : > { %v321_v25 = vsel %vm313_vm0, %v309_v13, -inf  ;;  %v316_v29 = vmax.f32 %v314_v14, %v315_v24  ;;  %v336_v30 = vrot.slane %v335_v28, 4  ;;  %v330_v32 = vmax.f32 %v328_v16, %v329_v27  ;;  %s976_s26 = smov [#allocation8]  }
  0x60   : > { %v359_v9 = vrot.slane %v306_v6, %v358_v2  ;;  %v363_v10 = vrot.slane %v306_v6, %v362_v3  ;;  %v367_v11 = vrot.slane %v306_v6, %v366_v4  ;;  %v371_v12 = vrot.slane %v306_v6, %v370_v5  ;;  %p827_p7 = pnand %p826_p0, %p1356_p5  ;;  %s829_s8 = sshll.u32 %s976_s26, 4  ;;  %s830_s8 = int_to_ptr.vmem [resolvable:$false] %s829_s8 }
  0x61   : > { %v322_v26 = vrot.slane %v321_v25, 4  ;;  %v317_v33 = vrot.slane %v316_v29, 2  ;;  %v337_v34 = vmax.f32 %v335_v28, %v336_v30  ;;  %v331_v36 = vrot.slane %v330_v32, 2  ;;  %s831_s7 = scalar_lea.vmem %s830_s8, 512  ;;  %p832_p10 = scmp.lt.s32.totalorder %s1212_s9, %s830_s8 }
  0x62   : > { %vm372_vm1 = vcmp.eq.s32.totalorder %v303_v1, %v359_v9  ;;  %vm373_vm2 = vcmp.eq.s32.totalorder %v303_v1, %v363_v10  ;;  %vm374_vm3 = vcmp.eq.s32.totalorder %v303_v1, %v367_v11  ;;  %vm375_vm4 = vcmp.eq.s32.totalorder %v303_v1, %v371_v12  ;;  %p828_p4 = pneg %p827_p7  ;;  %p833_p12 = scmp.lt.s32.totalorder %s831_s7, %s825_s22 }
  0x63   : > { %v1188_v18 = vsel %vm372_vm1, 1.0, %v975_v17  ;;  %v1190_v19 = vsel %vm373_vm2, 1.0, %v975_v17  ;;  %v1192_v20 = vsel %vm374_vm3, 1.0, %v975_v17  ;;  %v1194_v21 = vsel %vm375_vm4, 1.0, %v975_v17 }
  0x64   : > { %v414_v22 = vcombine.low %v1188_v18, %v1190_v19  ;;  %v415_v23 = vcombine.low %v1192_v20, %v1194_v21  ;;  %v323_v31 = vmax.f32 %v321_v25, %v322_v26  ;;  %p834_p1 = por %p833_p12, %p832_p10 }
  0x66   : > { %420 = vst [vmem:[%s280_s10] sm:$0xff] %v414_v22  ;;  %421 = vst [vmem:[%s280_s10 + $0x8] sm:$0xff] %v415_v23  ;;  %v324_v35 = vrot.slane %v323_v31, 2  ;;  %p835_p2 = pnand %p834_p1, %p828_p4 }
  0x68   : > { %838 = shalt.err (!%p835_p2)
}
  0x69   : > { %s839_s13 = scalar_lea.hbm %s1210_s5, 256  ;;  %s843_s27 = scalar_lea.hbm %s1341_s3, 512 }
  0x6a   : > { %p840_p9 = scmp.ne.s32.totalorder %s1210_s5, %s839_s13  ;;  %p844_p6 = scmp.lt.u32.totalorder %s1210_s5, %s1341_s3 }
  0x6b   : > { %p845_p13 = scmp.lt.u32.totalorder %s843_s27, %s839_s13  ;;  %p847_p0 = scmp.lt.u32.totalorder %s839_s13, %s1210_s5 }
  0x6c   : > { %p841_p11 = pnand %p840_p9, %p1356_p5 }
  0x6d   : > { %p846_p8 = por %p845_p13, %p844_p6 }
  0x6e   : > { %p842_p3 = pneg %p841_p11 }
  0x6f   : > { %p848_p7 = por %p847_p0, %p846_p8 }
  0x71   : > { %p849_p4 = pnand %p848_p7, %p842_p3 }
  0x73   : > { %852 = shalt.err (!%p849_p4)
}
  0x74   : > { %686 = dma.vmem_to_hbm [thread:$0]  (%p1356_p5), %s1212_s9, 256, %s1210_s5, %s1214_s25   ;;  %v318_v37 = vmax.f32 %v316_v29, %v317_v33  ;;  %v338_v38 = vrot.slane %v337_v34, 2  ;;  %v325_v39 = vmax.f32 %v323_v31, %v324_v35  ;;  %v332_v40 = vmax.f32 %v330_v32, %v331_v36 }
  0x75   : > { %s287_s9 = scalar_lea.vmem [#allocation10], %s1161_s14  ;;  %s1247_s26 = scalar_lea.hbm %s1342_s4, %s1197_s6 }
  0x76   : > { %v319_v41 = vrot.slane %v318_v37, 1  ;;  %v339_v42 = vmax.f32 %v337_v34, %v338_v38  ;;  %v326_v43 = vrot.slane %v325_v39, 1  ;;  %v333_v44 = vrot.slane %v332_v40, 1  ;;  %s481_s21 = sshll.u32 %s287_s9, 4  ;;  %s1254_s8 = scalar_lea.vmem [#allocation7], %s1161_s14  ;;  %s1249_s21 = int_to_ptr.vmem [resolvable:$true] %s481_s21 }
  0x77   : > { %s453_s7 = sshll.u32 %s1254_s8, 4  ;;  %s853_s13 = scalar_lea.vmem %s1249_s21, 256  ;;  %s1287_s7 = int_to_ptr.vmem [resolvable:$true] %s453_s7 }
  0x78   : > { %v320_v45 = vmax.f32 %v318_v37, %v319_v41  ;;  %v340_v46 = vrot.slane %v339_v42, 1  ;;  %v327_v47 = vmax.f32 %v325_v39, %v326_v43  ;;  %v334_v48 = vmax.f32 %v332_v40, %v333_v44  ;;  %p854_p10 = scmp.ne.s32.totalorder %s1249_s21, %s853_s13  ;;  %s977_s24 = smov [#allocation10]  }
  0x79   : > { %s857_s11 = sshll.u32 %s977_s24, 4  ;;  %s858_s11 = int_to_ptr.vmem [resolvable:$false] %s857_s11 }
  0x7a   : > { %v341_v49 = vmax.f32 %v339_v42, %v340_v46  ;;  %v346_v50 = vcombine.low %v320_v45, %v327_v47  ;;  %p855_p12 = pnand %p854_p10, %p1356_p5  ;;  %s859_s27 = scalar_lea.vmem %s858_s11, 512 }
  0x7b   : > { %p860_p2 = scmp.lt.s32.totalorder %s1249_s21, %s858_s11  ;;  %p861_p9 = scmp.lt.s32.totalorder %s859_s27, %s853_s13 }
  0x7c   : > { %v347_v51 = vcombine.low %v334_v48, %v341_v49  ;;  %v350_v52 = vsub.f32 %v1175_v7, %v346_v50  ;;  %p856_p1 = pneg %p855_p12 }
  0x7d   : > { %p862_p11 = por %p861_p9, %p860_p2 }
  0x7e   : > { %v351_v53 = vsub.f32 %v1177_v8, %v347_v51  ;;  %v352_v54 = vmul.f32 1.442695, %v350_v52 }
  0x7f   : > { %p863_p3 = pnand %p862_p11, %p856_p1 }
  0x80   : > { %v354_v55 = vmul.f32 1.442695, %v351_v53  ;;  %761 = vpow2.f32 %v352_v54 }
  0x82   : > { %763 = vpow2.f32 %v354_v55 }
  0x8a   : > { %v762_v56 = vpop.eup %761 }
  0x8b   : > { %v388_v58 = vcombine.high %v762_v56, %v762_v56  ;;  %v392_v59 = vmul.f32 %v762_v56, %v1188_v18  ;;  %426 = vst [vmem:[%s287_s9] sm:$0xff] %v762_v56 }
  0x8c   : > { %v764_v57 = vpop.eup %763 }
  0x8d   : > { %v389_v60 = vcombine.high %v764_v57, %v764_v57  ;;  %v394_v61 = vmul.f32 %v764_v57, %v1192_v20  ;;  %v393_v62 = vmul.f32 %v1190_v19, %v388_v58  ;;  %427 = vst [vmem:[%s287_s9 + $0x8] sm:$0xff] %v764_v57 }
  0x8f   : > { %v395_v63 = vmul.f32 %v1194_v21, %v389_v60  ;;  %v400_v0 = vcombine.low %v392_v59, %v393_v62 }
  0x90   : > { %866 = shalt.err (!%p863_p3)
}
  0x91   : > { %s867_s14 = scalar_lea.hbm %s1247_s26, 256  ;;  %s871_s9 = scalar_lea.hbm %s1342_s4, 512 }
  0x92   : > { %p868_p6 = scmp.ne.s32.totalorder %s1247_s26, %s867_s14  ;;  %p872_p0 = scmp.lt.u32.totalorder %s1247_s26, %s1342_s4 }
  0x93   : > { %p873_p7 = scmp.lt.u32.totalorder %s871_s9, %s867_s14  ;;  %p875_p10 = scmp.lt.u32.totalorder %s867_s14, %s1247_s26 }
  0x94   : > { %p869_p13 = pnand %p868_p6, %p1356_p5 }
  0x95   : > { %p874_p4 = por %p873_p7, %p872_p0 }
  0x96   : > { %p870_p8 = pneg %p869_p13 }
  0x97   : > { %p876_p12 = por %p875_p10, %p874_p4 }
  0x99   : > { %p877_p1 = pnand %p876_p12, %p870_p8 }
  0x9b   : > { %880 = shalt.err (!%p877_p1)
}
  0x9c   : > { %687 = dma.vmem_to_hbm [thread:$0]  (%p1356_p5), %s1249_s21, 256, %s1247_s26, %s1214_s25   ;;  %v401_v1 = vcombine.low %v394_v61, %v395_v63  ;;  %406 = vst [vmem:[%s1254_s8] sm:$0xff] %v400_v0 }
  0x9d   : > { %s1283_s11 = scalar_lea.hbm %s1340_s2, %s1197_s6  ;;  %s429_s27 = scalar_lea.sflag [#allocation4], %s1158_s12 }
  0x9e   : > { %407 = vst [vmem:[%s1254_s8 + $0x8] sm:$0xff] %v401_v1  ;;  %s881_s14 = scalar_lea.vmem %s1287_s7, 256  ;;  %s978_s25 = smov [#allocation7]  }
  0x9f   : > { %p882_p2 = scmp.ne.s32.totalorder %s1287_s7, %s881_s14  ;;  %s885_s21 = sshll.u32 %s978_s25, 4  ;;  %s886_s21 = int_to_ptr.vmem [resolvable:$false] %s885_s21 }
  0xa0   : > { %s887_s26 = scalar_lea.vmem %s886_s21, 512  ;;  %p888_p3 = scmp.lt.s32.totalorder %s1287_s7, %s886_s21 }
  0xa1   : > { %p883_p9 = pnand %p882_p2, %p1356_p5  ;;  %p889_p6 = scmp.lt.s32.totalorder %s887_s26, %s881_s14 }
  0xa3   : > { %p884_p11 = pneg %p883_p9  ;;  %p890_p13 = por %p889_p6, %p888_p3 }
  0xa5   : > { %p891_p8 = pnand %p890_p13, %p884_p11 }
  0xa7   : > { %894 = shalt.err (!%p891_p8)
}
  0xa8   : > { %s895_s12 = scalar_lea.hbm %s1283_s11, 256  ;;  %s899_s10 = scalar_lea.hbm %s1340_s2, 512 }
  0xa9   : > { %p896_p0 = scmp.ne.s32.totalorder %s1283_s11, %s895_s12  ;;  %p900_p10 = scmp.lt.u32.totalorder %s1283_s11, %s1340_s2 }
  0xaa   : > { %p901_p12 = scmp.lt.u32.totalorder %s899_s10, %s895_s12  ;;  %p903_p2 = scmp.lt.u32.totalorder %s895_s12, %s1283_s11 }
  0xab   : > { %p897_p7 = pnand %p896_p0, %p1356_p5 }
  0xac   : > { %p902_p1 = por %p901_p12, %p900_p10 }
  0xad   : > { %p898_p4 = pneg %p897_p7 }
  0xae   : > { %p904_p9 = por %p903_p2, %p902_p1 }
  0xb0   : > { %p905_p11 = pnand %p904_p9, %p898_p4 }
  0xb2   : > { %908 = shalt.err (!%p905_p11)
}
  0xb3   : > { %685 = dma.vmem_to_hbm [thread:$0]  (%p1356_p5), %s1287_s7, 256, %s1283_s11, %s429_s27  }
  0xb4 PF: > { %s493_s5 = sand.u32 1, %s951_s15   ;;  %p1357_p3 = scmp.ne.s32.totalorder %s1349_s30, 0 }
  0xb5   : > { %p1358_p6 = scmp.ge.s32.totalorder %s971_s20, 2  ;;  %s494_s22 = scalar_lea.sflag [#allocation4], %s493_s5 }
  0xb7   : > { %p699_p13 = pnand %p1358_p6, %p1357_p3 }
  0xb9   : > { %942 = dma.done.wait (!%p699_p13), %s494_s22, 256  }
  0xba   : > { %944 = vsyncadd (!%p699_p13), %s494_s22, 4294967040  ;;  %s1359_s13 = sadd.s32 4294967294, %s971_s20  }
  0xbb   : > { %s502_s24 = sand.u32 1, %s1359_s13  }
  0xbc   : > { %s503_s14 = scalar_lea.sflag [#allocation9], %s502_s24 }
  0xbd   : > { %946 = dma.done.wait (!%p699_p13), %s503_s14, 512  }
  0xbe   : > { %948 = vsyncadd (!%p699_p13), %s503_s14, 4294966784  ;;  %s27_s20 = sadd.s32 1, %s971_s20   ;;  %s1360_s15 = smov %s955_s16 }
  0xbf   : > { %p24_p5 = scmp.ge.s32.totalorder %s27_s20, 4   ;;  %s1361_s16 = smov %s959_s17 }
  0xc0   : > { %s1362_s17 = smov %s1066_s29  ;;  %s1363_s18 = smov %s967_s19 }
  0xc1   : > { %s1364_s19 = smov %s1366_s23  ;;  %26 = sbr.rel (!%p24_p5) target bundleno = 10 (0xa), region = 122 }
  0xc8   :  { %517 = vsyncpa [#allocation3], 1 }
  0xc9   :  { %519 = vsyncpa [#allocation3 + $0x1], 1 }
  0xca   :  { %520 = vsyncpa [#allocation6], 1 }
  0xcb   :  { %522 = vsyncpa [#allocation6 + $0x1], 1 }
  0xcc   :  { %523 = vsyncpa [#allocation4], 1 }
  0xcd   :  { %525 = vsyncpa [#allocation4 + $0x1], 1 }
  0xce   :  { %526 = vsyncpa [#allocation9], 1 }
  0xcf   :  { %528 = vsyncpa [#allocation9 + $0x1], 1 }

</bundles_post_ra>
